<compile_context>
chip_gen: v7x
topology: tpu7x:2x2x1
jax: 0.10.0
libtpu: 0.0.40
codegen_flags: <defaults>
</compile_context>

<pallas_src>
import jax
import jax.numpy as jnp
from jax.experimental import pallas as pl
from jax.experimental.pallas import tpu as pltpu


def _projection_head_kernel(h_ref, w1_ref, b1_ref, w2_ref, b2_ref, o_ref):
    eps = 1e-12
    h32 = h_ref[...].astype(jnp.float32)

    # F.normalize(p=2, dim=-1): x / max(||x||, eps) == x * rsqrt(max(sum x^2, eps^2)).
    # The scale is folded into the matmul epilogue below (matmul is linear in h).
    inv1 = jax.lax.rsqrt(
        jnp.maximum(jnp.sum(h32 * h32, axis=-1, keepdims=True), eps * eps))

    # hidden = Linear(E, E); relu.  MXU operands in the weight dtype
    # (bf16 on the fast path), accumulation in f32; biases are f32.
    z = jnp.dot(h_ref[...].astype(w1_ref.dtype), w1_ref[...],
                preferred_element_type=jnp.float32) * inv1 + b1_ref[...]
    z = jnp.maximum(z, 0.0)

    # out = Linear(E, H)
    y = jnp.dot(z.astype(w2_ref.dtype), w2_ref[...],
                preferred_element_type=jnp.float32) + b2_ref[...]

    # final F.normalize (zero-padded head columns add nothing to the norm).
    inv2 = jax.lax.rsqrt(
        jnp.maximum(jnp.sum(y * y, axis=-1, keepdims=True), eps * eps))
    o_ref[...] = (y * inv2).astype(o_ref.dtype)


def projection_head(h, w1, b1, w2, b2, *, block_b=None,
                    weight_dtype=jnp.bfloat16):
    """h: [B, E]; w1: [E, E]; b1: [E]; w2: [E, H]; b2: [H] -> [B, H].

    Output dtype matches h's dtype (pass h as bf16 for the low-traffic path);
    weight_dtype=jnp.float32 gives exact PyTorch-parity numerics.
    """
    B, E = h.shape
    H = w2.shape[1]

    # --- output lane-density guard: pad head dim to a multiple of 128 ---------
    Hp = int(pl.cdiv(H, 128) * 128)
    if Hp != H:
        w2 = jnp.pad(w2, ((0, 0), (0, Hp - H)))
        b2 = jnp.pad(b2, ((0, Hp - H),))

    # Weights feed the MXU; bf16 (or fp8 on v7x) halves their HBM traffic and
    # VMEM footprint while the kernel still accumulates in f32.  Biases stay
    # f32 (tiny, added post-accumulation).
    w1 = w1.astype(weight_dtype)
    w2 = w2.astype(weight_dtype)
    b1_2d = b1.astype(jnp.float32).reshape(1, E)
    b2_2d = b2.astype(jnp.float32).reshape(1, Hp)

    # --- scoped-VMEM budget derived from the actual part --------------------
    try:
        vmem_cap = int(pltpu.get_tpu_info().vmem_capacity_bytes)
    except Exception:  # conservative fallback (v7x-sized)
        vmem_cap = 64 << 20
    # Leave ~8 MiB for Mosaic internal scratch; never ask for more than ~100 MiB.
    hard_cap = min(vmem_cap - (8 << 20), 100 << 20)

    wbytes = jnp.dtype(weight_dtype).itemsize
    abytes = jnp.dtype(h.dtype).itemsize

    def _vmem_estimate(blk):
        # Pallas double-buffers *every* input BlockSpec (including the
        # grid-invariant weights/biases), so count them twice.
        est = 2 * (E * E + E * Hp) * wbytes + 2 * (E + Hp) * 4
        est += 2 * blk * (E + Hp) * abytes        # double-buffered h / out tiles
        est += 4 * blk * (E + Hp) * 4             # f32 temporaries headroom
        return est

    # --- batch-tile plan ------------------------------------------------------
    pack = 16 if h.dtype == jnp.bfloat16 else 8
    if block_b is None:
        if B <= pack:
            block_b = B
        else:
            # Large tiles amortize the ~0.35 us per-step pipeline overhead.
            block_b = max(pack, (min(B, 1024) // pack) * pack)
            # Guarantee >= 2 grid steps so the "parallel" batch axis can be
            # sharded across both TensorCores on v7x.
            if pl.cdiv(B, block_b) < 2:
                block_b = pack * ((B + 2 * pack - 1) // (2 * pack))
    block_b = max(1, min(block_b, B))
    # Shrink the tile if the plan would not fit under the scoped-VMEM cap.
    while _vmem_estimate(block_b) > hard_cap and block_b > pack:
        block_b = max(pack, ((block_b // 2) // pack) * pack)

    grid = (pl.cdiv(B, block_b),)
    vmem_limit = int(min(max(int(1.25 * _vmem_estimate(block_b)), 32 << 20),
                         hard_cap))

    cost = pl.CostEstimate(
        flops=2 * B * E * E + 2 * B * E * Hp,
        transcendentals=2 * B,
        bytes_accessed=(B * (E * abytes + Hp * abytes)
                        + (E * E + E * Hp) * wbytes + (E + Hp) * 4),
    )

    out = pl.pallas_call(
        _projection_head_kernel,
        out_shape=jax.ShapeDtypeStruct((B, Hp), h.dtype),
        grid_spec=pltpu.PrefetchScalarGridSpec(
            num_scalar_prefetch=0,
            grid=grid,
            in_specs=[
                pl.BlockSpec((block_b, E), lambda i: (i, 0)),  # h tile (pipelined)
                pl.BlockSpec((E, E), lambda i: (0, 0)),        # w1 (resident)
                pl.BlockSpec((1, E), lambda i: (0, 0)),        # b1 (resident)
                pl.BlockSpec((E, Hp), lambda i: (0, 0)),       # w2 (resident)
                pl.BlockSpec((1, Hp), lambda i: (0, 0)),       # b2 (resident)
            ],
            out_specs=pl.BlockSpec((block_b, Hp), lambda i: (i, 0)),
        ),
        compiler_params=pltpu.CompilerParams(
            dimension_semantics=("parallel",),   # batch tiles are independent
            vmem_limit_bytes=vmem_limit,
        ),
        cost_estimate=cost,
    )(h, w1, b1_2d, w2, b2_2d)

    return out[:, :H] if Hp != H else out


def _reference(h, w1, b1, w2, b2):
    eps = 1e-12
    x = h / jnp.maximum(jnp.linalg.norm(h, axis=-1, keepdims=True), eps)
    x = jnp.maximum(x @ w1 + b1, 0.0)
    x = x @ w2 + b2
    return x / jnp.maximum(jnp.linalg.norm(x, axis=-1, keepdims=True), eps)


if __name__ == "__main__":
    # Small shapes consistent with the module (emb_size, head_size).
    B, EMB, HEAD = 64, 128, 256

    key = jax.random.PRNGKey(0)
    k_h, k_w1, k_b1, k_w2, k_b2 = jax.random.split(key, 5)

    h = jax.random.normal(k_h, (B, EMB), dtype=jnp.float32)

    # Deterministic synthetic nn.Linear-like init, stored pre-transposed [in, out].
    bound = 1.0 / (EMB ** 0.5)
    w1 = jax.random.uniform(k_w1, (EMB, EMB), jnp.float32, -bound, bound)
    b1 = jax.random.uniform(k_b1, (EMB,), jnp.float32, -bound, bound)
    w2 = jax.random.uniform(k_w2, (EMB, HEAD), jnp.float32, -bound, bound)
    b2 = jax.random.uniform(k_b2, (HEAD,), jnp.float32, -bound, bound)

    ref = _reference(h, w1, b1, w2, b2)

    # Exact path: f32 weights, auto-tiled batch (>=2 grid steps) -> PyTorch parity.
    out_f32 = projection_head(h, w1, b1, w2, b2, weight_dtype=jnp.float32)
    out_f32 = jax.block_until_ready(out_f32)
    assert out_f32.shape == (B, HEAD)
    assert jnp.allclose(out_f32, ref, atol=1e-5, rtol=1e-5), "f32 mismatch vs reference"

    # Fast path (default): bf16 MXU weights, f32 activations & accumulation.
    out_bf16w = jax.block_until_ready(projection_head(h, w1, b1, w2, b2))
    assert out_bf16w.shape == (B, HEAD)
    assert jnp.allclose(out_bf16w, ref, atol=2e-2, rtol=0.0), "bf16-weight mismatch"

    # Low-HBM-traffic path: bf16 activations end-to-end (norms stay f32 inside).
    out_bf16a = jax.block_until_ready(
        projection_head(h.astype(jnp.bfloat16), w1, b1, w2, b2))
    assert out_bf16a.shape == (B, HEAD) and out_bf16a.dtype == jnp.bfloat16
    assert jnp.allclose(out_bf16a.astype(jnp.float32), ref,
                        atol=4e-2, rtol=0.0), "bf16-activation mismatch"

    print("KERNEL_OK")
</pallas_src>

<mosaic_0001>
module attributes {stable_mosaic.version = 11 : i64} {
  func.func @_projection_head_kernel(%arg0: i32, %arg1: memref<32x128xf32, #tpu.memory_space<vmem>>, %arg2: memref<128x128xf32, #tpu.memory_space<vmem>>, %arg3: memref<1x128xf32, #tpu.memory_space<vmem>>, %arg4: memref<128x256xf32, #tpu.memory_space<vmem>>, %arg5: memref<1x256xf32, #tpu.memory_space<vmem>>, %arg6: memref<32x256xf32, #tpu.memory_space<vmem>>) attributes {dimension_semantics = [#tpu.dimension_semantics<parallel>], iteration_bounds = array<i64: 2>, scalar_prefetch = 0 : i64, scratch_operands = 0 : i64, tpu.core_type = #tpu.core_type<tc>, window_params = [{transform_indices = @transform_0, window_bounds = array<i64: 32, 128>}, {pipeline_mode = #tpu.pipeline_mode<synchronous>, transform_indices = @transform_1, window_bounds = array<i64: 128, 128>}, {pipeline_mode = #tpu.pipeline_mode<synchronous>, transform_indices = @transform_2, window_bounds = array<i64: 1, 128>}, {pipeline_mode = #tpu.pipeline_mode<synchronous>, transform_indices = @transform_3, window_bounds = array<i64: 128, 256>}, {pipeline_mode = #tpu.pipeline_mode<synchronous>, transform_indices = @transform_4, window_bounds = array<i64: 1, 256>}, {transform_indices = @transform_5, window_bounds = array<i64: 32, 256>}]} {
    %c0 = arith.constant 0 : index
    %c0_0 = arith.constant 0 : index
    %0 = vector.load %arg1[%c0, %c0_0] : memref<32x128xf32, #tpu.memory_space<vmem>>, vector<32x128xf32>
    %1 = arith.mulf %0, %0 : vector<32x128xf32>
    %cst = arith.constant dense<0.000000e+00> : vector<32xf32>
    %2 = vector.multi_reduction <add>, %1, %cst [1] : vector<32x128xf32> to vector<32xf32>
    %3 = vector.shape_cast %2 : vector<32xf32> to vector<32x1xf32>
    %cst_1 = arith.constant 1.000000e-24 : f32
    %4 = vector.broadcast %cst_1 : f32 to vector<32x1xf32>
    %5 = arith.maximumf %3, %4 : vector<32x1xf32>
    %6 = math.rsqrt %5 : vector<32x1xf32>
    %c0_2 = arith.constant 0 : index
    %c0_3 = arith.constant 0 : index
    %7 = vector.load %arg1[%c0_2, %c0_3] : memref<32x128xf32, #tpu.memory_space<vmem>>, vector<32x128xf32>
    %c0_4 = arith.constant 0 : index
    %c0_5 = arith.constant 0 : index
    %8 = vector.load %arg2[%c0_4, %c0_5] : memref<128x128xf32, #tpu.memory_space<vmem>>, vector<128x128xf32>
    %cst_6 = arith.constant dense<0.000000e+00> : vector<32x128xf32>
    %9 = tpu.matmul %7, %8, %cst_6 {dimension_numbers = #tpu.dot_dimension_numbers<[1], [0], [0], [1], [0, 0, 1, 1], [], []>} : vector<32x128xf32>, vector<128x128xf32>, vector<32x128xf32> -> vector<32x128xf32>
    %10 = vector.broadcast %6 : vector<32x1xf32> to vector<32x128xf32>
    %11 = arith.mulf %9, %10 : vector<32x128xf32>
    %c0_7 = arith.constant 0 : index
    %c0_8 = arith.constant 0 : index
    %12 = vector.load %arg3[%c0_7, %c0_8] : memref<1x128xf32, #tpu.memory_space<vmem>>, vector<1x128xf32>
    %13 = vector.broadcast %12 : vector<1x128xf32> to vector<32x128xf32>
    %14 = arith.addf %11, %13 : vector<32x128xf32>
    %cst_9 = arith.constant 0.000000e+00 : f32
    %15 = vector.broadcast %cst_9 : f32 to vector<32x128xf32>
    %16 = arith.maximumf %14, %15 : vector<32x128xf32>
    %c0_10 = arith.constant 0 : index
    %c0_11 = arith.constant 0 : index
    %17 = vector.load %arg4[%c0_10, %c0_11] : memref<128x256xf32, #tpu.memory_space<vmem>>, vector<128x256xf32>
    %cst_12 = arith.constant dense<0.000000e+00> : vector<32x256xf32>
    %18 = tpu.matmul %16, %17, %cst_12 {dimension_numbers = #tpu.dot_dimension_numbers<[1], [0], [0], [1], [0, 0, 1, 1], [], []>} : vector<32x128xf32>, vector<128x256xf32>, vector<32x256xf32> -> vector<32x256xf32>
    %c0_13 = arith.constant 0 : index
    %c0_14 = arith.constant 0 : index
    %19 = vector.load %arg5[%c0_13, %c0_14] : memref<1x256xf32, #tpu.memory_space<vmem>>, vector<1x256xf32>
    %20 = vector.broadcast %19 : vector<1x256xf32> to vector<32x256xf32>
    %21 = arith.addf %18, %20 : vector<32x256xf32>
    %22 = arith.mulf %21, %21 : vector<32x256xf32>
    %cst_15 = arith.constant dense<0.000000e+00> : vector<32xf32>
    %23 = vector.multi_reduction <add>, %22, %cst_15 [1] : vector<32x256xf32> to vector<32xf32>
    %24 = vector.shape_cast %23 : vector<32xf32> to vector<32x1xf32>
    %cst_16 = arith.constant 1.000000e-24 : f32
    %25 = vector.broadcast %cst_16 : f32 to vector<32x1xf32>
    %26 = arith.maximumf %24, %25 : vector<32x1xf32>
    %27 = math.rsqrt %26 : vector<32x1xf32>
    %28 = vector.broadcast %27 : vector<32x1xf32> to vector<32x256xf32>
    %29 = arith.mulf %21, %28 : vector<32x256xf32>
    %c0_17 = arith.constant 0 : index
    %c0_18 = arith.constant 0 : index
    %30 = vector.load %arg6[%c0_17, %c0_18] : memref<32x256xf32, #tpu.memory_space<vmem>>, vector<32x256xf32>
    tpu.vector_store %arg6[%c0_17, %c0_18], %29 {strides = array<i32>} : memref<32x256xf32, #tpu.memory_space<vmem>>, vector<32x256xf32>,
    return
  }
  func.func @transform_0(%arg0: i32) -> (i32, i32) {
    %c0_i32 = arith.constant 0 : i32
    %c0_i32_0 = arith.constant 0 : i32
    return %arg0, %c0_i32 : i32, i32
  }
  func.func @transform_1(%arg0: i32) -> (i32, i32) {
    %c0_i32 = arith.constant 0 : i32
    %c0_i32_0 = arith.constant 0 : i32
    %c0_i32_1 = arith.constant 0 : i32
    return %c0_i32, %c0_i32_0 : i32, i32
  }
  func.func @transform_2(%arg0: i32) -> (i32, i32) {
    %c0_i32 = arith.constant 0 : i32
    %c0_i32_0 = arith.constant 0 : i32
    %c0_i32_1 = arith.constant 0 : i32
    return %c0_i32, %c0_i32_0 : i32, i32
  }
  func.func @transform_3(%arg0: i32) -> (i32, i32) {
    %c0_i32 = arith.constant 0 : i32
    %c0_i32_0 = arith.constant 0 : i32
    %c0_i32_1 = arith.constant 0 : i32
    return %c0_i32, %c0_i32_0 : i32, i32
  }
  func.func @transform_4(%arg0: i32) -> (i32, i32) {
    %c0_i32 = arith.constant 0 : i32
    %c0_i32_0 = arith.constant 0 : i32
    %c0_i32_1 = arith.constant 0 : i32
    return %c0_i32, %c0_i32_0 : i32, i32
  }
  func.func @transform_5(%arg0: i32) -> (i32, i32) {
    %c0_i32 = arith.constant 0 : i32
    %c0_i32_0 = arith.constant 0 : i32
    return %arg0, %c0_i32 : i32, i32
  }
}

</mosaic_0001>

<bundles_post_ra>
// kernel: tpu_custom_call.1
= control target key start
LH: loop header
LB: loop body
LE: loop exit
PB: predicated region body
PF: predicated region fallthrough
CT: control target
= control target key end

     0   :  { %10 = vsyncpa [#allocation3], 0  ;;  %s1398_s0 = inlined_call_operand.hbm [shape: f32[64,128], index: 0, kind: input, shape index: {}]   ;;  %s1399_s1 = inlined_call_operand.hbm [shape: f32[128,128], index: 1, kind: input, shape index: {}]   ;;  %s1400_s2 = inlined_call_operand.vmem [shape: f32[1,128], index: 2, kind: input, shape index: {}]   ;;  %s1401_s3 = inlined_call_operand.hbm [shape: f32[128,256], index: 3, kind: input, shape index: {}]   ;;  %s1402_s4 = inlined_call_operand.vmem [shape: f32[1,256], index: 4, kind: input, shape index: {}]   ;;  %s1403_s5 = inlined_call_operand.hbm [shape: f32[64,256], index: 5, kind: output, shape index: {}]  }
   0x1   :  { %12 = vsyncpa [#allocation3 + $0x1], 0 }
   0x2   :  { %13 = vsyncpa [#allocation6], 0 }
   0x3   :  { %14 = vsyncpa [#allocation4], 0 }
   0x4   :  { %16 = vsyncpa [#allocation4 + $0x1], 0  ;;  %s1136_s18 = smov 0   ;;  %s1138_s19 = smov 0  }
   0x5   :  { %s1140_s20 = smov 0   ;;  %s1142_s21 = smov 0  }
   0x6 LB: > { %s1157_s22 = sadd.s32 4294967295, %s1093_s21   ;;  %s702_s23 = sadd.s32 4294967294, %s1093_s21   ;;  %s1093_s21 = sphi %s1142_s21, %s1423_s21   ;;  %s1089_s20 = sphi %s1140_s20, %s1422_s20   ;;  %s1085_s19 = sphi %s1138_s19, %s1421_s19   ;;  %s1081_s18 = sphi %s1136_s18, %s1420_s18  }
   0x7   : > { %p42_p0 = scmp.ne.s32.totalorder %s1085_s19, %s1081_s18  ;;  %p1404_p1 = scmp.eq.s32.totalorder %s1157_s22, 0 }
   0x8   : > { %p156_p3 = scmp.eq.s32.totalorder %s702_s23, 1  ;;  %p703_p5 = scmp.ge.s32.totalorder %s1093_s21, 1 }
   0x9   : > { %p1166_p4 = por %p1404_p1, %p42_p0  ;;  %p163_p7 = scmp.lt.s32.totalorder %s1093_s21, 3 }
   0xa   : > { %p1171_p6 = por %p156_p3, %p42_p0  ;;  %s1095_s27 = smov [#allocation5]  }
   0xb   : > { %s1407_s24 = scalar_select %p1166_p4, 1, 0 }
   0xc   : > { %s1408_s25 = scalar_select %p1171_p6, 1, 0 }
   0xd   : > { %p1176_p8 = pnand %p703_p5, %p163_p7  ;;  %s175_s28 = sshll.u32 %s1095_s27, 4  ;;  %s1180_s28 = int_to_ptr.vmem [resolvable:$true] %s175_s28 }
   0xe   : > { %s1096_s30 = smov [#allocation7]   ;;  %s937_s9 = scalar_lea.hbm %s1399_s1, 2048 }
   0xf   : > { %p859_p9 = pneg %p1176_p8  ;;  %s191_s6 = sshll.u32 %s1096_s30, 4  ;;  %s1191_s6 = int_to_ptr.vmem [resolvable:$true] %s191_s6 }
  0x10   : > { %p938_p12 = scmp.ne.s32.totalorder %s1399_s1, %s937_s9  ;;  %p944_p5 = scmp.lt.u32.totalorder %s937_s9, %s1399_s1 }
  0x11   : > { %p1187_p11 = pnand %p859_p9, %p1404_p1 }
  0x13   : > { %p939_p13 = pneg %p1187_p11 }
  0x15   : > { %p940_p0 = pnand %p939_p13, %p938_p12 }
  0x17   : > { %p941_p3 = pneg %p940_p0 }
  0x19   : > { %p946_p7 = pnand %p944_p5, %p941_p3 }
  0x1b   : > { %949 = shalt.err (!%p946_p7)
}
  0x1c   : > { %s950_s14 = scalar_lea.vmem %s1180_s28, 2048  ;;  %p958_p2 = scmp.lt.s32.totalorder %s1180_s28, %s1180_s28 }
  0x1d   : > { %p951_p9 = scmp.ne.s32.totalorder %s1180_s28, %s950_s14  ;;  %p959_p12 = scmp.lt.s32.totalorder %s950_s14, %s950_s14 }
  0x1f   : > { %p953_p10 = pnand %p951_p9, %p939_p13  ;;  %p960_p0 = por %p959_p12, %p958_p2 }
  0x21   : > { %p954_p1 = pneg %p953_p10 }
  0x23   : > { %p961_p6 = pnand %p960_p0, %p954_p1 }
  0x25   : > { %964 = shalt.err (!%p961_p6)
}
  0x26   : > { %s1097_s15 = smov 128   ;;  %s1098_s16 = smov 8  }
  0x27   : > { %862 = dma.hbm_to_vmem [thread:$0]  (!%p1187_p11), %s1399_s1, 2048, %s1180_s28, [#allocation6], %s1097_s15, %s1097_s15, %s1098_s16  }
  0x28   : > { %s965_s7 = scalar_lea.hbm %s1401_s3, 4096 }
  0x29   : > { %p966_p1 = scmp.ne.s32.totalorder %s1401_s3, %s965_s7  ;;  %p972_p10 = scmp.lt.u32.totalorder %s965_s7, %s1401_s3 }
  0x2b   : > { %p968_p2 = pnand %p966_p1, %p939_p13 }
  0x2d   : > { %p969_p6 = pneg %p968_p2 }
  0x2f   : > { %p974_p3 = pnand %p972_p10, %p969_p6 }
  0x31   : > { %977 = shalt.err (!%p974_p3)
}
  0x32   : > { %s978_s28 = scalar_lea.vmem %s1191_s6, 4096  ;;  %p986_p12 = scmp.lt.s32.totalorder %s1191_s6, %s1191_s6 }
  0x33   : > { %p979_p5 = scmp.ne.s32.totalorder %s1191_s6, %s978_s28  ;;  %p987_p0 = scmp.lt.s32.totalorder %s978_s28, %s978_s28 }
  0x35   : > { %p981_p7 = pnand %p979_p5, %p939_p13  ;;  %p988_p1 = por %p987_p0, %p986_p12 }
  0x37   : > { %p982_p9 = pneg %p981_p7 }
  0x39   : > { %p989_p2 = pnand %p988_p1, %p982_p9 }
  0x3b   : > { %992 = shalt.err (!%p989_p2)
}
  0x3c   : > { %s1099_s12 = smov 256   ;;  %s1100_s13 = smov 16  }
  0x3d   : > { %865 = dma.hbm_to_vmem [thread:$0]  (!%p1187_p11), %s1401_s3, 4096, %s1191_s6, [#allocation6], %s1099_s12, %s1099_s12, %s1100_s13  }
  0x3e   : > { %s1249_s23 = sadd.s32 1, %s1093_s21   ;;  %s29_s30 = sadd.s32 1, %s1089_s20 }
  0x3f   : > { %s26_s27 = ssub.s32 %s1093_s21, %s1249_s23  ;;  %p36_p6 = scmp.ne.s32.totalorder %s1089_s20, %s1085_s19 }
  0x40   : > { %p27_p13 = scmp.eq.s32.totalorder %s26_s27, 0  ;;  %p37_p10 = scmp.eq.s32.totalorder %s1093_s21, 0 }
  0x41   : > { %p1411_p5 = scmp.eq.s32.totalorder %s1157_s22, 1  ;;  %p876_p9 = scmp.lt.s32.totalorder %s1093_s21, 2 }
  0x42   : > { %s1258_s7 = scalar_select %p27_p13, %s1089_s20, %s29_s30  }
  0x43   : > { %p38_p3 = por %p37_p10, %p36_p6  ;;  %p1262_p7 = por %p1411_p5, %p36_p6 }
  0x44   : > { %s208_s29 = sand.u32 1, %s1089_s20   ;;  %s722_s6 = sshll.u32 %s1093_s21, 9 }
  0x45   : > { %s1412_s8 = scalar_select %p1262_p7, 1, 0 }
  0x46   : > { %s707_s9 = sshll.u32 %s208_s29, 5  ;;  %s1272_s28 = scalar_lea.hbm %s1398_s0, %s722_s6 }
  0x47   : > { %s212_s12 = scalar_lea.vmem [#allocation2], %s707_s9  ;;  %p1276_p11 = pnand %p876_p9, %p38_p3 }
  0x48   : > { %s219_s13 = sshll.u32 %s212_s12, 4  ;;  %s1280_s17 = scalar_lea.sflag [#allocation3], %s208_s29  ;;  %s1274_s13 = int_to_ptr.vmem [resolvable:$true] %s219_s13 }
  0x49   : > { %s993_s27 = scalar_lea.hbm %s1272_s28, 512  ;;  %p995_p0 = pneg %p1276_p11 }
  0x4a   : > { %p994_p12 = scmp.ne.s32.totalorder %s1272_s28, %s993_s27  ;;  %s998_s6 = scalar_lea.hbm %s1398_s0, 1024 }
  0x4b   : > { %p999_p13 = scmp.lt.u32.totalorder %s1272_s28, %s1398_s0  ;;  %p1000_p6 = scmp.lt.u32.totalorder %s998_s6, %s993_s27 }
  0x4c   : > { %p996_p1 = pnand %p995_p0, %p994_p12  ;;  %p1002_p3 = scmp.lt.u32.totalorder %s993_s27, %s1272_s28 }
  0x4d   : > { %p1001_p10 = por %p1000_p6, %p999_p13 }
  0x4e   : > { %p997_p2 = pneg %p996_p1 }
  0x4f   : > { %p1003_p5 = por %p1002_p3, %p1001_p10 }
  0x51   : > { %p1004_p9 = pnand %p1003_p5, %p997_p2 }
  0x53   : > { %1007 = shalt.err (!%p1004_p9)
}
  0x54   : > { %s1008_s29 = scalar_lea.vmem %s1274_s13, 512  ;;  %s1101_s12 = smov [#allocation2]  }
  0x55   : > { %p1009_p12 = scmp.ne.s32.totalorder %s1274_s13, %s1008_s29  ;;  %s1013_s30 = sshll.u32 %s1101_s12, 4  ;;  %s1014_s30 = int_to_ptr.vmem [resolvable:$false] %s1013_s30 }
  0x56   : > { %s1015_s9 = scalar_lea.vmem %s1014_s30, 1024  ;;  %p1016_p4 = scmp.lt.s32.totalorder %s1274_s13, %s1014_s30 }
  0x57   : > { %p1011_p1 = pnand %p1009_p12, %p995_p0  ;;  %p1017_p13 = scmp.lt.s32.totalorder %s1015_s9, %s1008_s29 }
  0x59   : > { %p1012_p7 = pneg %p1011_p1  ;;  %p1018_p6 = por %p1017_p13, %p1016_p4 }
  0x5b   : > { %p1019_p10 = pnand %p1018_p6, %p1012_p7 }
  0x5d   : > { %1022 = shalt.err (!%p1019_p10)
}
  0x5e   : > { %869 = dma.hbm_to_vmem [thread:$0]  (!%p1276_p11), %s1272_s28, 512, %s1274_s13, %s1280_s17, %s1097_s15, %s1097_s15, %s1098_s16  }
  0x5f   : > { %231 = sbr.rel (%p1176_p8) target bundleno = 763 (0x2fb), region = 40  ;;  %s1314_s27 = sand.u32 (!%p1176_p8), 1, %s1085_s19  }
  0x60   : > { %s711_s6 = sshll.u32 (!%p1176_p8), %s1314_s27, 5  ;;  %s234_s10 = scalar_lea.sflag (!%p1176_p8), [#allocation3], %s1314_s27 }
  0x61   : > { %s237_s11 = scalar_lea.vmem (!%p1176_p8), [#allocation2], %s711_s6  ;;  %p1414_p4 = scmp.ne.s32.totalorder (!%p1176_p8), %s1407_s24, 0 }
  0x66   : > { %1068 = dma.done.wait (%p1414_p4), %s234_s10, 512  }
  0x67   : > { %1070 = vsyncadd (%p1414_p4), %s234_s10, 4294966784  ;;  %p1415_p7 = scmp.eq.s32.totalorder %s1157_s22, 0 }
  0x69   : > { %1072 = dma.done.wait (%p1415_p7), [#allocation6], 6144   ;;  %p1416_p11 = pmov %p1415_p7 }
  0x6a   : > { %v298_v0 = vld [vmem:[#allocation5] sm:$0xff]  ;;  %v299_v1 = vld [vmem:[#allocation5 + $0x8] sm:$0xff]  ;;  %v300_v2 = vld [vmem:[#allocation5 + $0x10] sm:$0xff]  ;;  %s714_s28 = sshll.u32 %s1314_s27, 6  ;;  %s724_s14 = sshll.u32 %s1157_s22, 10 }
  0x6b   : > { %1074 = vsyncadd (%p1416_p11), [#allocation6], 4294961152  ;;  %v783_v3 = vpack.c.bf16 %v299_v1, %v298_v0  ;;  %v301_v4 = vld [vmem:[#allocation5 + $0x18] sm:$0xff]  ;;  %v302_v6 = vld [vmem:[#allocation5 + $0x20] sm:$0xff]  ;;  %s271_s13 = scalar_lea.vmem [#allocation8], %s714_s28  ;;  %s1352_s30 = scalar_lea.hbm %s1403_s5, %s724_s14 }
  0x6c   : > { %v787_v5 = vpack.c.bf16 %v301_v4, %v300_v2  ;;  %v303_v7 = vld [vmem:[#allocation5 + $0x28] sm:$0xff]  ;;  %v304_v8 = vld [vmem:[#allocation5 + $0x30] sm:$0xff]  ;;  %v305_v10 = vld [vmem:[#allocation5 + $0x38] sm:$0xff]  ;;  %s610_s17 = sshll.u32 %s271_s13, 4  ;;  %s596_s9 = scalar_lea.sflag [#allocation4], %s1314_s27  ;;  %s1354_s17 = int_to_ptr.vmem [resolvable:$true] %s610_s17 }
  0x6d   : > { %784 = vmatprep.subr.bf16.mxu0 %v783_v3  ;;  %v791_v9 = vpack.c.bf16 %v303_v7, %v302_v6  ;;  %v274_v11 = vld [vmem:[%s237_s11] sm:$0xff]  ;;  %v1326_v12 = vld [vmem:[%s237_s11 + $0x8] sm:$0xff]  ;;  %v1328_v13 = vld [vmem:[%s237_s11 + $0x10] sm:$0xff]  ;;  %v795_v27 = vpack.c.bf16 %v305_v10, %v304_v8  ;;  %s1023_s22 = scalar_lea.vmem %s1354_s17, 1024  ;;  %p1417_p0 = scmp.ne.s32.totalorder %s1412_s8, 0 }
  0x6e   : > { %786 = vmatpush3.bf16.msra.mxu0 %v783_v3  ;;  %777 = vmatprep.mubr.f32.mxu0 %v274_v11  ;;  %v1330_v14 = vld [vmem:[%s237_s11 + $0x18] sm:$0xff]  ;;  %v278_v15 = vmul.f32 %v274_v11, %v274_v11  ;;  %v419_v16 = vld [vmem:[#allocation7 + $0x8] sm:$0xff]  ;;  %v280_v17 = vmul.f32 %v1328_v13, %v1328_v13  ;;  %v418_v19 = vld [vmem:[#allocation7] sm:$0xff]  ;;  %v279_v21 = vmul.f32 %v1326_v12, %v1326_v12  ;;  %p1024_p8 = scmp.ne.s32.totalorder %s1354_s17, %s1023_s22  ;;  %s1103_s6 = smov [#allocation8]  }
  0x6f   : > { %788 = vmatprep.subr.bf16.mxu0 %v787_v5  ;;  %v421_v18 = vld [vmem:[#allocation7 + $0x18] sm:$0xff]  ;;  %v420_v20 = vld [vmem:[#allocation7 + $0x10] sm:$0xff]  ;;  %v423_v24 = vld [vmem:[#allocation7 + $0x28] sm:$0xff]  ;;  %v281_v28 = vmul.f32 %v1330_v14, %v1330_v14  ;;  %s1027_s10 = sshll.u32 %s1103_s6, 4  ;;  %s1028_s10 = int_to_ptr.vmem [resolvable:$false] %s1027_s10 }
  0x70   : > { %282 = vadd.xlane.f32.xlu0 %v278_v15  ;;  %v815_v22 = vpack.c.bf16 %v421_v18, %v419_v16  ;;  %v817_v23 = vpack.c.bf16 %v420_v20, %v418_v19  ;;  %v425_v25 = vld [vmem:[#allocation7 + $0x38] sm:$0xff]  ;;  %v422_v26 = vld [vmem:[#allocation7 + $0x20] sm:$0xff]  ;;  %286 = vadd.xlane.f32.xlu1 %v280_v17  ;;  %v424_v29 = vld [vmem:[#allocation7 + $0x30] sm:$0xff]  ;;  %v1102_v17 = vmov 0.0   ;;  %p1025_p2 = pnand %p1024_p8, %p1417_p0  ;;  %s1029_s11 = scalar_lea.vmem %s1028_s10, 2048 }
  0x71   : > { %v306_v30 = vld [vmem:[#allocation5 + $0x40] sm:$0xff]  ;;  %v307_v31 = vld [vmem:[#allocation5 + $0x48] sm:$0xff]  ;;  %v819_v32 = vpack.c.bf16 %v425_v25, %v423_v24  ;;  %v821_v33 = vpack.c.bf16 %v424_v29, %v422_v26  ;;  %v308_v35 = vld [vmem:[#allocation5 + $0x50] sm:$0xff]  ;;  %526 = vmatprep.mubr.f32.mxu1 %v1102_v17  ;;  %p1030_p5 = scmp.lt.s32.totalorder %s1354_s17, %s1028_s10  ;;  %p1031_p9 = scmp.lt.s32.totalorder %s1029_s11, %s1023_s22 }
  0x72   : > { %790 = vmatpush3.bf16.msra.mxu0 %v787_v5  ;;  %816 = vmatprep.subr.bf16.mxu1 %v815_v22  ;;  %v799_v34 = vpack.c.bf16 %v307_v31, %v306_v30  ;;  %v309_v36 = vld [vmem:[#allocation5 + $0x58] sm:$0xff]  ;;  %v310_v38 = vld [vmem:[#allocation5 + $0x60] sm:$0xff]  ;;  %v311_v39 = vld [vmem:[#allocation5 + $0x68] sm:$0xff]  ;;  %p1026_p3 = pneg %p1025_p2 }
  0x73   : > { %792 = vmatprep.subr.bf16.mxu0 %v791_v9  ;;  %818 = vmatpush1.bf16.msra.mxu1 %v817_v23  ;;  %v803_v37 = vpack.c.bf16 %v309_v36, %v308_v35  ;;  %v807_v40 = vpack.c.bf16 %v311_v39, %v310_v38  ;;  %v312_v41 = vld [vmem:[#allocation5 + $0x70] sm:$0xff]  ;;  %v313_v42 = vld [vmem:[#allocation5 + $0x78] sm:$0xff]  ;;  %v427_v43 = vld [vmem:[#allocation7 + $0x48] sm:$0xff]  ;;  %p1032_p12 = por %p1031_p9, %p1030_p5 }
  0x74   : > { %284 = vadd.xlane.f32.xlu0 %v279_v21  ;;  %288 = vadd.xlane.f32.xlu1 %v281_v28  ;;  %v429_v44 = vld [vmem:[#allocation7 + $0x58] sm:$0xff]  ;;  %v426_v45 = vld [vmem:[#allocation7 + $0x40] sm:$0xff]  ;;  %v811_v46 = vpack.c.bf16 %v313_v42, %v312_v41  ;;  %v428_v48 = vld [vmem:[#allocation7 + $0x50] sm:$0xff] }
  0x75   : > { %820 = vmatprep.subr.bf16.mxu1 %v819_v32  ;;  %v823_v47 = vpack.c.bf16 %v429_v44, %v427_v43  ;;  %v825_v49 = vpack.c.bf16 %v428_v48, %v426_v45  ;;  %v431_v50 = vld [vmem:[#allocation7 + $0x68] sm:$0xff]  ;;  %v433_v51 = vld [vmem:[#allocation7 + $0x78] sm:$0xff]  ;;  %v430_v52 = vld [vmem:[#allocation7 + $0x60] sm:$0xff]  ;;  %p1033_p1 = pnand %p1032_p12, %p1026_p3 }
  0x76   : > { %794 = vmatpush3.bf16.msra.mxu0 %v791_v9  ;;  %v827_v53 = vpack.c.bf16 %v433_v51, %v431_v50  ;;  %v432_v54 = vld [vmem:[#allocation7 + $0x70] sm:$0xff]  ;;  %v435_v55 = vld [vmem:[#allocation7 + $0x88] sm:$0xff]  ;;  %v437_v56 = vld [vmem:[#allocation7 + $0x98] sm:$0xff] }
  0x77   : > { %796 = vmatprep.subr.bf16.mxu0 %v795_v27  ;;  %822 = vmatpush1.bf16.msra.mxu1 %v821_v33  ;;  %v829_v57 = vpack.c.bf16 %v432_v54, %v430_v52  ;;  %v831_v58 = vpack.c.bf16 %v437_v56, %v435_v55  ;;  %v434_v59 = vld [vmem:[#allocation7 + $0x80] sm:$0xff]  ;;  %v436_v60 = vld [vmem:[#allocation7 + $0x90] sm:$0xff]  ;;  %v439_v61 = vld [vmem:[#allocation7 + $0xa8] sm:$0xff] }
  0x78   : > { %824 = vmatprep.subr.bf16.mxu1 %v823_v47  ;;  %v441_v62 = vld [vmem:[#allocation7 + $0xb8] sm:$0xff]  ;;  %v833_v63 = vpack.c.bf16 %v436_v60, %v434_v59  ;;  %v438_v1 = vld [vmem:[#allocation7 + $0xa0] sm:$0xff]  ;;  %v440_v2 = vld [vmem:[#allocation7 + $0xb0] sm:$0xff] }
  0x79   : > { %v835_v0 = vpack.c.bf16 %v441_v62, %v439_v61  ;;  %v837_v3 = vpack.c.bf16 %v440_v2, %v438_v1  ;;  %v443_v4 = vld [vmem:[#allocation7 + $0xc8] sm:$0xff]  ;;  %v445_v5 = vld [vmem:[#allocation7 + $0xd8] sm:$0xff]  ;;  %v442_v7 = vld [vmem:[#allocation7 + $0xc0] sm:$0xff] }
  0x7a   : > { %798 = vmatpush3.bf16.msra.mxu0 %v795_v27  ;;  %v839_v6 = vpack.c.bf16 %v445_v5, %v443_v4  ;;  %v444_v8 = vld [vmem:[#allocation7 + $0xd0] sm:$0xff]  ;;  %v447_v10 = vld [vmem:[#allocation7 + $0xe8] sm:$0xff]  ;;  %v449_v11 = vld [vmem:[#allocation7 + $0xf8] sm:$0xff] }
  0x7b   : > { %800 = vmatprep.subr.bf16.mxu0 %v799_v34  ;;  %826 = vmatpush1.bf16.msra.mxu1 %v825_v49  ;;  %v841_v9 = vpack.c.bf16 %v444_v8, %v442_v7  ;;  %v843_v15 = vpack.c.bf16 %v449_v11, %v447_v10  ;;  %v448_v16 = vld [vmem:[#allocation7 + $0xf0] sm:$0xff]  ;;  %v715_v28 = vld [vmem:[%s1400_s2] ss:$0 sm:$0xff] }
  0x7c   : > { %828 = vmatprep.subr.bf16.mxu1 %v827_v53  ;;  %v450_v49 = vld [vmem:[%s1402_s4] sm:$0x3] }
  0x7e   : > { %802 = vmatpush3.bf16.msra.mxu0 %v799_v34 }
  0x7f   : > { %804 = vmatprep.subr.bf16.mxu0 %v803_v37  ;;  %830 = vmatpush1.bf16.msra.mxu1 %v829_v57 }
  0x80   : > { %832 = vmatprep.subr.bf16.mxu1 %v831_v58 }
  0x82   : > { %806 = vmatpush3.bf16.msra.mxu0 %v803_v37 }
  0x83   : > { %808 = vmatprep.subr.bf16.mxu0 %v807_v40  ;;  %834 = vmatpush1.bf16.msra.mxu1 %v833_v63 }
  0x84   : > { %836 = vmatprep.subr.bf16.mxu1 %v835_v0 }
  0x86   : > { %810 = vmatpush3.bf16.msra.mxu0 %v807_v40 }
  0x87   : > { %812 = vmatprep.subr.bf16.mxu0 %v811_v46  ;;  %838 = vmatpush1.bf16.msra.mxu1 %v837_v3 }
  0x88   : > { %840 = vmatprep.subr.bf16.mxu1 %v839_v6 }
  0x8a   : > { %814 = vmatpush3.bf16.msra.mxu0 %v811_v46  ;;  %v452_v46 = vlaneseq }
  0x8b   : > { %842 = vmatpush1.bf16.msra.mxu1 %v841_v9 }
  0x8c   : > { %844 = vmatprep.subr.bf16.mxu1 %v843_v15  ;;  %v453_v47 = vshrl.u32 %v452_v46, 7 }
  0x8d   : > { %778 = vmatmul.mubr.f32.vlgmr.msra.gmra.mrb[0].mxu0 %v1326_v12  ;;  %v446_v12 = vld [vmem:[#allocation7 + $0xe0] sm:$0xff] }
  0x8e   : > { %780 = vmatprep.mubr.f32.mxu0 %v1328_v13  ;;  %v845_v13 = vpack.c.bf16 %v448_v16, %v446_v12  ;;  %v454_v48 = vsub.s32 0, %v453_v47  ;;  %v458_v50 = vsub.s32 1, %v453_v47 }
  0x90   : > { %846 = vmatpush1.bf16.msra.mxu1 %v845_v13  ;;  %v455_v51 = vrot.slane %v450_v49, %v454_v48  ;;  %v459_v52 = vrot.slane %v450_v49, %v458_v50 }
  0x91   : > { %781 = vmatmul.mubr.f32.gmra.mrb[2].mxu0 %v1330_v14 }
  0xfd   : > { %v283_v14 = vpop.xlane.xlu0 %282  ;;  %v287_v20 = vpop.xlane.xlu1 %286 }
  0xfe   : > { %v290_v19 = vmax.f32 %v283_v14, 1e-24  ;;  %v292_v22 = vmax.f32 %v287_v20, 1e-24 }
 0x100   : > { %921 = vrsqrt.f32 %v290_v19 }
 0x101   : > { %v285_v18 = vpop.xlane.xlu0 %284  ;;  %v289_v23 = vpop.xlane.xlu1 %288 }
 0x102   : > { %v291_v21 = vmax.f32 %v285_v18, 1e-24  ;;  %v293_v24 = vmax.f32 %v289_v23, 1e-24 }
 0x104   : > { %923 = vrsqrt.f32 %v291_v21 }
 0x105   : > { %925 = vrsqrt.f32 %v292_v22 }
 0x106   : > { %927 = vrsqrt.f32 %v293_v24 }
 0x10a   : > { %v922_v25 = vpop.eup %921 }
 0x10e   : > { %v924_v26 = vpop.eup %923 }
 0x10f   : > { %v926_v32 = vpop.eup %925 }
 0x110   : > { %v928_v39 = vpop.eup %927 }
 0x160   : > { %v779_v27 = vpop.f32.mrb[0].mxu0 }
 0x161   : > { %v380_v29 = vpop.f32.mrb[1].mxu0  ;;  %v400_v30 = vmul.f32 %v924_v26, %v779_v27 }
 0x162   : > { %v399_v31 = vmul.f32 %v922_v25, %v380_v29 }
 0x163   : > { %v411_v36 = vadd.f32 %v715_v28, %v400_v30 }
 0x164   : > { %v410_v33 = vadd.f32 %v715_v28, %v399_v31  ;;  %v782_v34 = vpop.f32.mrb[2].mxu0 }
 0x165   : > { %v390_v35 = vpop.f32.mrb[3].mxu0  ;;  %v415_v41 = vmax.f32 %v411_v36, 0.0  ;;  %v402_v42 = vmul.f32 %v928_v39, %v782_v34 }
 0x166   : > { %v414_v37 = vmax.f32 %v410_v33, 0.0  ;;  %v401_v38 = vmul.f32 %v926_v32, %v390_v35 }
 0x167   : > { %v413_v44 = vadd.f32 %v715_v28, %v402_v42 }
 0x168   : > { %v412_v40 = vadd.f32 %v715_v28, %v401_v38  ;;  %527 = vmatmul.mubr.f32.vlgmr.msra.gmra.mrb[0].mxu1 %v414_v37 }
 0x169   : > { %532 = vmatprep.mubr.f32.mxu1 %v1102_v17  ;;  %v417_v45 = vmax.f32 %v413_v44, 0.0 }
 0x16a   : > { %v416_v43 = vmax.f32 %v412_v40, 0.0 }
 0x16c   : > { %533 = vmatmul.mubr.f32.gmra.mrb[2].mxu1 %v415_v41 }
 0x16d   : > { %538 = vmatprep.mubr.f32.mxu1 %v1102_v17 }
 0x170   : > { %539 = vmatmul.mubr.f32.gmra.mrb[4].mxu1 %v416_v43 }
 0x171   : > { %544 = vmatprep.mubr.f32.mxu1 %v1102_v17 }
 0x174   : > { %545 = vmatmul.mubr.f32.gmra.mrb[6].mxu1 %v417_v45 }
 0x23b   : > { %v528_v53 = vpop.f32.mrb[0].mxu1 }
 0x23c   : > { %v529_v54 = vadd.f32 %v528_v53, %v455_v51  ;;  %v530_v55 = vpop.f32.mrb[1].mxu1 }
 0x23d   : > { %v531_v56 = vadd.f32 %v530_v55, %v459_v52 }
 0x23e   : > { %v551_v57 = vmul.f32 %v529_v54, %v529_v54 }
 0x23f   : > { %v552_v58 = vmul.f32 %v531_v56, %v531_v56  ;;  %v534_v59 = vpop.f32.mrb[2].mxu1 }
 0x240   : > { %v535_v60 = vadd.f32 %v534_v59, %v455_v51  ;;  %v536_v61 = vpop.f32.mrb[3].mxu1 }
 0x241   : > { %v537_v62 = vadd.f32 %v536_v61, %v459_v52  ;;  %v559_v63 = vadd.f32 %v552_v58, %v551_v57 }
 0x242   : > { %v553_v0 = vmul.f32 %v535_v60, %v535_v60 }
 0x243   : > { %v554_v1 = vmul.f32 %v537_v62, %v537_v62  ;;  %560 = vadd.xlane.f32.xlu0 %v559_v63  ;;  %v540_v2 = vpop.f32.mrb[4].mxu1 }
 0x244   : > { %v541_v3 = vadd.f32 %v540_v2, %v455_v51  ;;  %v542_v4 = vpop.f32.mrb[5].mxu1 }
 0x245   : > { %v543_v5 = vadd.f32 %v542_v4, %v459_v52  ;;  %v562_v6 = vadd.f32 %v554_v1, %v553_v0 }
 0x246   : > { %v555_v7 = vmul.f32 %v541_v3, %v541_v3 }
 0x247   : > { %v556_v8 = vmul.f32 %v543_v5, %v543_v5  ;;  %v546_v9 = vpop.f32.mrb[6].mxu1  ;;  %563 = vadd.xlane.f32.xlu1 %v562_v6 }
 0x248   : > { %v547_v10 = vadd.f32 %v546_v9, %v455_v51  ;;  %v548_v11 = vpop.f32.mrb[7].mxu1 }
 0x249   : > { %v549_v15 = vadd.f32 %v548_v11, %v459_v52  ;;  %v565_v12 = vadd.f32 %v556_v8, %v555_v7 }
 0x24a   : > { %v557_v16 = vmul.f32 %v547_v10, %v547_v10 }
 0x24b   : > { %v558_v13 = vmul.f32 %v549_v15, %v549_v15  ;;  %566 = vadd.xlane.f32.xlu0 %v565_v12 }
 0x24d   : > { %v568_v17 = vadd.f32 %v558_v13, %v557_v16 }
 0x24f   : > { %569 = vadd.xlane.f32.xlu1 %v568_v17 }
 0x2d0   : > { %v561_v14 = vpop.xlane.xlu0 %560 }
 0x2d1   : > { %v571_v18 = vmax.f32 %v561_v14, 1e-24 }
 0x2d3   : > { %929 = vrsqrt.f32 %v571_v18 }
 0x2d4   : > { %v564_v19 = vpop.xlane.xlu1 %563 }
 0x2d5   : > { %v572_v20 = vmax.f32 %v564_v19, 1e-24 }
 0x2d7   : > { %931 = vrsqrt.f32 %v572_v20 }
 0x2d8   : > { %v567_v21 = vpop.xlane.xlu0 %566 }
 0x2d9   : > { %v573_v22 = vmax.f32 %v567_v21, 1e-24 }
 0x2db   : > { %933 = vrsqrt.f32 %v573_v22 }
 0x2dc   : > { %v570_v23 = vpop.xlane.xlu1 %569 }
 0x2dd   : > { %v930_v24 = vpop.eup %929  ;;  %v574_v25 = vmax.f32 %v570_v23, 1e-24 }
 0x2de   : > { %v579_v26 = vmul.f32 %v930_v24, %v529_v54  ;;  %v580_v27 = vmul.f32 %v930_v24, %v531_v56 }
 0x2df   : > { %935 = vrsqrt.f32 %v574_v25 }
 0x2e0   : > { %587 = vst [vmem:[%s271_s13] sm:$0xff] %v579_v26  ;;  %588 = vst [vmem:[%s271_s13 + $0x8] sm:$0xff] %v580_v27 }
 0x2e1   : > { %v932_v28 = vpop.eup %931 }
 0x2e2   : > { %v581_v29 = vmul.f32 %v932_v28, %v535_v60  ;;  %v582_v30 = vmul.f32 %v932_v28, %v537_v62 }
 0x2e4   : > { %589 = vst [vmem:[%s271_s13 + $0x10] sm:$0xff] %v581_v29  ;;  %590 = vst [vmem:[%s271_s13 + $0x18] sm:$0xff] %v582_v30 }
 0x2e5   : > { %v934_v31 = vpop.eup %933 }
 0x2e6   : > { %v583_v32 = vmul.f32 %v934_v31, %v541_v3  ;;  %v584_v33 = vmul.f32 %v934_v31, %v543_v5 }
 0x2e8   : > { %591 = vst [vmem:[%s271_s13 + $0x20] sm:$0xff] %v583_v32  ;;  %592 = vst [vmem:[%s271_s13 + $0x28] sm:$0xff] %v584_v33 }
 0x2e9   : > { %v936_v34 = vpop.eup %935 }
 0x2ea   : > { %v585_v35 = vmul.f32 %v936_v34, %v547_v10  ;;  %v586_v36 = vmul.f32 %v936_v34, %v549_v15 }
 0x2ec   : > { %593 = vst [vmem:[%s271_s13 + $0x30] sm:$0xff] %v585_v35  ;;  %594 = vst [vmem:[%s271_s13 + $0x38] sm:$0xff] %v586_v36 }
 0x2ed   : > { %1036 = shalt.err (!%p1033_p1)
}
 0x2ee   : > { %s1037_s24 = scalar_lea.hbm %s1352_s30, 1024  ;;  %s1041_s16 = scalar_lea.hbm %s1403_s5, 2048 }
 0x2ef   : > { %p1038_p13 = scmp.ne.s32.totalorder %s1352_s30, %s1037_s24  ;;  %p1042_p4 = scmp.lt.u32.totalorder %s1352_s30, %s1403_s5 }
 0x2f0   : > { %p1043_p7 = scmp.lt.u32.totalorder %s1041_s16, %s1037_s24  ;;  %p1045_p8 = scmp.lt.u32.totalorder %s1037_s24, %s1352_s30 }
 0x2f1   : > { %p1039_p6 = pnand %p1038_p13, %p1417_p0 }
 0x2f2   : > { %p1044_p11 = por %p1043_p7, %p1042_p4 }
 0x2f3   : > { %p1040_p10 = pneg %p1039_p6 }
 0x2f4   : > { %p1046_p2 = por %p1045_p8, %p1044_p11 }
 0x2f6   : > { %p1047_p3 = pnand %p1046_p2, %p1040_p10 }
 0x2f8   : > { %1050 = shalt.err (!%p1047_p3)
}
 0x2f9   : > { %s1104_s14 = smov 256   ;;  %s1105_s29 = smov 16  }
 0x2fa   : > { %857 = dma.vmem_to_hbm [thread:$0]  (%p1417_p0), %s1354_s17, 1024, %s1352_s30, %s596_s9, %s1104_s14, %s1104_s14, %s1105_s29  }
 0x2fb PF: > { %s625_s12 = sand.u32 1, %s1081_s18   ;;  %p1418_p5 = scmp.ne.s32.totalorder %s1408_s25, 0 }
 0x2fc   : > { %p1419_p9 = scmp.ge.s32.totalorder %s1093_s21, 2  ;;  %s626_s22 = scalar_lea.sflag [#allocation4], %s625_s12 }
 0x2fe   : > { %p871_p12 = pnand %p1419_p9, %p1418_p5 }
 0x300   : > { %1076 = dma.done.wait (!%p871_p12), %s626_s22, 1024  }
 0x301   : > { %1078 = vsyncadd (!%p871_p12), %s626_s22, 4294966272  ;;  %p19_p1 = scmp.ge.s32.totalorder %s1249_s23, 4   ;;  %s1420_s18 = smov %s1085_s19 }
 0x302   : > { %s1421_s19 = smov %s1089_s20  ;;  %s1422_s20 = smov %s1258_s7 }
 0x303   : > { %s1423_s21 = smov %s1249_s23  ;;  %21 = sbr.rel (!%p19_p1) target bundleno = 6 (0x6), region = 93 }
 0x30a   :  { %631 = vsyncpa [#allocation3], 1 }
 0x30b   :  { %633 = vsyncpa [#allocation3 + $0x1], 1 }
 0x30c   :  { %634 = vsyncpa [#allocation6], 1 }
 0x30d   :  { %635 = vsyncpa [#allocation4], 1 }
 0x30e   :  { %637 = vsyncpa [#allocation4 + $0x1], 1 }

</bundles_post_ra>
